<compile_context>
chip_gen: v7x
topology: tpu7x:2x2x1
jax: 0.10.0
libtpu: 0.0.40
codegen_flags: <defaults>
</compile_context>

<pallas_src>
import jax
import jax.numpy as jnp
from jax.experimental import pallas as pl
from jax.experimental.pallas import tpu as pltpu


def _prob_affine_kernel(x_ref, scale_ref, bias_ref, o_ref):
    # x_ref : VMEM (TR, TL)   scale_ref/bias_ref : VMEM (TR, 1) f32
    x = x_ref[...].astype(jnp.float32)
    y = x * scale_ref[...] + bias_ref[...]      # per-row affine, broadcasts on lanes
    o_ref[...] = y.astype(o_ref.dtype)


def _largest_aligned_divisor(n, align, cap):
    """Largest d with d % align == 0, d | n, d <= cap; None if no such d."""
    best = None
    d = align
    limit = min(n, cap)
    while d <= limit:
        if n % d == 0:
            best = d
        d += align
    return best


def _choose_tiles(R, L, itemsize):
    """Pick (TR, TL) that evenly tile (R, L), lane-dense, ~<=4 MiB per tile."""
    MAX_TILE_BYTES = 4 * 1024 * 1024   # v7x-safe: ~4x this resident when double-buffered
    # Lane tile: keep the output lane-dense (multiple of 128) whenever possible.
    if L > 0 and L % 128 == 0:
        tl = _largest_aligned_divisor(L, 128, 4096) or L
    else:
        tl = L                          # full-dim exception
    # Row tile: fill the remaining VMEM budget with rows (multiple of 8).
    max_rows = max(8, MAX_TILE_BYTES // max(1, tl * itemsize))
    if R > 0 and R % 8 == 0:
        tr = _largest_aligned_divisor(R, 8, max_rows) or R
    else:
        tr = R                          # full-dim exception
    return tr, tl


def prob_transform(x, scale_c, bias_c, apply_flag):
    """x: (N, C, H, W); scale_c, bias_c: (C,); apply_flag: int32[1] (1 -> apply f)."""
    N, C, H, W = x.shape
    R, L = N * C, H * W

    # Fold the Bernoulli coin into the parameters (identity map when flag == 0).
    flag = apply_flag.reshape(())[...] != 0
    scale_eff = jnp.where(flag, scale_c.astype(jnp.float32),
                          jnp.ones_like(scale_c, dtype=jnp.float32))
    bias_eff = jnp.where(flag, bias_c.astype(jnp.float32),
                         jnp.zeros_like(bias_c, dtype=jnp.float32))

    # One (scale, bias) value per (n, c) row of the 2-D view.
    scale_rows = jnp.tile(scale_eff, (N,)).reshape(R, 1)
    bias_rows = jnp.tile(bias_eff, (N,)).reshape(R, 1)
    x2d = x.reshape(R, L)

    tr, tl = _choose_tiles(R, L, x.dtype.itemsize)
    grid = (R // tr, L // tl)

    tile_bytes = tr * tl * x.dtype.itemsize
    # double-buffered in + out tiles (+ tiny scale/bias) with headroom
    vmem_limit = int(min(96 * 1024 * 1024,
                         max(32 * 1024 * 1024, 6 * tile_bytes)))

    out2d = pl.pallas_call(
        _prob_affine_kernel,
        out_shape=jax.ShapeDtypeStruct((R, L), x.dtype),
        grid_spec=pl.GridSpec(
            grid=grid,
            in_specs=[
                pl.BlockSpec((tr, tl), lambda i, j: (i, j)),
                pl.BlockSpec((tr, 1), lambda i, j: (i, 0)),
                pl.BlockSpec((tr, 1), lambda i, j: (i, 0)),
            ],
            out_specs=pl.BlockSpec((tr, tl), lambda i, j: (i, j)),
        ),
        compiler_params=pltpu.CompilerParams(
            dimension_semantics=("parallel", "parallel"),
            vmem_limit_bytes=vmem_limit,
        ),
    )(x2d, scale_rows, bias_rows)

    return out2d.reshape(N, C, H, W)


if __name__ == "__main__":
    key = jax.random.PRNGKey(0)
    kx, kcoin = jax.random.split(key)

    # Small NCHW input, consistent with an image-transform module.
    N, C, H, W = 2, 4, 16, 16
    x = jax.random.normal(kx, (N, C, H, W), dtype=jnp.float32)

    # Deterministic "f" parameters (per-channel affine).
    scale_c = 1.0 + 0.1 * jnp.arange(C, dtype=jnp.float32)   # [1.0, 1.1, 1.2, 1.3]
    bias_c = 0.05 * jnp.arange(C, dtype=jnp.float32)         # [0.0, .05, .10, .15]

    # ProbTransform default p = 1  ->  random.random() < p is always True.
    # TODO(synk): host-side random.random() has no in-kernel equivalent; the
    # coin flip is drawn with jax.random in the wrapper.
    p = 1.0
    u = jax.random.uniform(kcoin, ())                        # deterministic coin flip
    apply_flag = jnp.asarray([jnp.int32(u < p)], dtype=jnp.int32)

    out = prob_transform(x, scale_c, bias_c, apply_flag)
    out = jax.block_until_ready(out)

    # Reference in plain JAX.
    fx_ref = x * scale_c.reshape(1, C, 1, 1) + bias_c.reshape(1, C, 1, 1)
    ref = jnp.where(apply_flag[0] != 0, fx_ref, x)
    assert out.shape == x.shape and out.dtype == x.dtype
    assert jnp.allclose(out, ref, atol=1e-6, rtol=1e-6)

    print("KERNEL_OK")
</pallas_src>

<mosaic_0001>
module attributes {stable_mosaic.version = 11 : i64} {
  func.func @_prob_affine_kernel(%arg0: i32, %arg1: i32, %arg2: memref<8x256xf32, #tpu.memory_space<vmem>>, %arg3: memref<8x1xf32, #tpu.memory_space<vmem>>, %arg4: memref<8x1xf32, #tpu.memory_space<vmem>>, %arg5: memref<8x256xf32, #tpu.memory_space<vmem>>) attributes {dimension_semantics = [#tpu.dimension_semantics<parallel>, #tpu.dimension_semantics<parallel>], iteration_bounds = array<i64: 1, 1>, scalar_prefetch = 0 : i64, scratch_operands = 0 : i64, tpu.core_type = #tpu.core_type<tc>, window_params = [{transform_indices = @transform_0, window_bounds = array<i64: 8, 256>}, {transform_indices = @transform_1, window_bounds = array<i64: 8, 1>}, {transform_indices = @transform_2, window_bounds = array<i64: 8, 1>}, {transform_indices = @transform_3, window_bounds = array<i64: 8, 256>}]} {
    %c0 = arith.constant 0 : index
    %c0_0 = arith.constant 0 : index
    %0 = vector.load %arg2[%c0, %c0_0] : memref<8x256xf32, #tpu.memory_space<vmem>>, vector<8x256xf32>
    %c0_1 = arith.constant 0 : index
    %c0_2 = arith.constant 0 : index
    %1 = vector.load %arg3[%c0_1, %c0_2] : memref<8x1xf32, #tpu.memory_space<vmem>>, vector<8x1xf32>
    %2 = vector.broadcast %1 : vector<8x1xf32> to vector<8x256xf32>
    %3 = arith.mulf %0, %2 : vector<8x256xf32>
    %c0_3 = arith.constant 0 : index
    %c0_4 = arith.constant 0 : index
    %4 = vector.load %arg4[%c0_3, %c0_4] : memref<8x1xf32, #tpu.memory_space<vmem>>, vector<8x1xf32>
    %5 = vector.broadcast %4 : vector<8x1xf32> to vector<8x256xf32>
    %6 = arith.addf %3, %5 : vector<8x256xf32>
    %c0_5 = arith.constant 0 : index
    %c0_6 = arith.constant 0 : index
    %7 = vector.load %arg5[%c0_5, %c0_6] : memref<8x256xf32, #tpu.memory_space<vmem>>, vector<8x256xf32>
    tpu.vector_store %arg5[%c0_5, %c0_6], %6 {strides = array<i32>} : memref<8x256xf32, #tpu.memory_space<vmem>>, vector<8x256xf32>,
    return
  }
  func.func @transform_0(%arg0: i32, %arg1: i32) -> (i32, i32) {
    %c0_i32 = arith.constant 0 : i32
    return %arg0, %arg1 : i32, i32
  }
  func.func @transform_1(%arg0: i32, %arg1: i32) -> (i32, i32) {
    %c0_i32 = arith.constant 0 : i32
    %c0_i32_0 = arith.constant 0 : i32
    return %arg0, %c0_i32 : i32, i32
  }
  func.func @transform_2(%arg0: i32, %arg1: i32) -> (i32, i32) {
    %c0_i32 = arith.constant 0 : i32
    %c0_i32_0 = arith.constant 0 : i32
    return %arg0, %c0_i32 : i32, i32
  }
  func.func @transform_3(%arg0: i32, %arg1: i32) -> (i32, i32) {
    %c0_i32 = arith.constant 0 : i32
    return %arg0, %arg1 : i32, i32
  }
}

</mosaic_0001>

<bundles_post_ra>
// kernel: tpu_custom_call.1
= control target key start
LH: loop header
LB: loop body
LE: loop exit
PB: predicated region body
PF: predicated region fallthrough
CT: control target
= control target key end

     0   :  { %s122_s0 = inlined_call_operand.vmem [shape: f32[8,256], index: 0, kind: input, shape index: {}]   ;;  %s123_s1 = inlined_call_operand.vmem [shape: f32[8,1], index: 1, kind: input, shape index: {}]   ;;  %s124_s2 = inlined_call_operand.vmem [shape: f32[8,1], index: 2, kind: input, shape index: {}]   ;;  %s125_s3 = inlined_call_operand.hbm [shape: f32[8,256], index: 3, kind: output, shape index: {}]  }
   0x1   :  { %v17_v0 = vld [vmem:[%s123_s1] sm:$0xff] }
   0x2   :  { %8 = vsyncpa [#allocation3], 0  ;;  %v76_v1 = vmov 0   ;;  %v25_v2 = vld [vmem:[%s124_s2] sm:$0xff]  ;;  %v16_v5 = vld [vmem:[%s122_s0 + $0x8] sm:$0xff]  ;;  %s77_s20 = smov [#allocation2]  }
   0x3   :  { %51 = vset.pattern.permute.xlu0 %v76_v1  ;;  %v15_v4 = vld [vmem:[%s122_s0] sm:$0xff]  ;;  %s41_s1 = sshll.u32 %s77_s20, 4  ;;  %s42_s1 = int_to_ptr.vmem [resolvable:$true] %s41_s1 }
   0x4   :  { %20 = vperm.xlu0 %51, %v17_v0   ;;  %s52_s2 = scalar_lea.vmem %s42_s1, 256  ;;  %p57_p1 = scmp.lt.s32.totalorder %s42_s1, %s42_s1 }
   0x5   :  { %p53_p0 = scmp.ne.s32.totalorder %s42_s1, %s52_s2  ;;  %p58_p2 = scmp.lt.s32.totalorder %s52_s2, %s52_s2 }
   0x7   :  { %p59_p3 = por %p58_p2, %p57_p1 }
   0x8   :  { %28 = vperm.xlu0 %51, %v25_v2  }
   0x9   :  { %p60_p4 = pnand %p59_p3, %p53_p0 }
  0x83   :  { %v21_v3 = vpop.permute.xlu0 %20 }
  0x84   :  { %v23_v6 = vmul.f32 %v21_v3, %v15_v4  ;;  %v24_v7 = vmul.f32 %v21_v3, %v16_v5 }
  0x87   :  { %v29_v8 = vpop.permute.xlu0 %28 }
  0x88   :  { %v31_v9 = vadd.f32 %v29_v8, %v23_v6  ;;  %v32_v10 = vadd.f32 %v29_v8, %v24_v7 }
  0x8a   :  { %33 = vst [vmem:[#allocation2] sm:$0xff] %v31_v9  ;;  %34 = vst [vmem:[#allocation2 + $0x8] sm:$0xff] %v32_v10 }
  0x8b   :  { %63 = shalt.err (!%p60_p4)
}
  0x8c   :  { %s64_s0 = scalar_lea.hbm %s125_s3, 256 }
  0x8d   :  { %p65_p5 = scmp.ne.s32.totalorder %s125_s3, %s64_s0  ;;  %p68_p6 = scmp.lt.u32.totalorder %s64_s0, %s125_s3 }
  0x8f   :  { %p70_p7 = pnand %p68_p6, %p65_p5 }
  0x91   :  { %73 = shalt.err (!%p70_p7)
}
  0x92   :  { %44 = dma.vmem_to_hbm [thread:$0]  %s42_s1, 256, %s125_s3, [#allocation3]  }
  0x93   :  { %74 = dma.done.wait [#allocation3], 256  }
  0x94   :  { %75 = vsyncadd [#allocation3], 4294967040 }
  0x95   :  { %48 = vsyncpa [#allocation3], 1 }

</bundles_post_ra>
